<compile_context>
chip_gen: v7x
topology: tpu7x:2x2x1
jax: 0.10.0
libtpu: 0.0.40
codegen_flags: <defaults>
</compile_context>

<pallas_src>
import functools

import jax
import jax.numpy as jnp
from jax.experimental import pallas as pl
from jax.experimental.pallas import tpu as pltpu

_EPS = 1e-8                     # torch.nn.CosineSimilarity default eps
_CHUNK = 512                    # rows per in-kernel compute chunk
_TARGET_BLOCK_BYTES = 8 << 20   # ~8 MiB of input per grid step (per input)
_VMEM_LIMIT = 48 << 20          # safe on v7x (64 MiB VMEM/TC), plenty on v5e/v6e


def _round_up(x, m):
    return (x + m - 1) // m * m


def _infonce_kernel(g_ref, s_ref, loss_ref, *, inv_temperature, n_cand, dim,
                    batch, chunk):
    """One grid step: (tile_b, N*D) blocks of graph/sent -> (tile_b, 1) losses."""
    tile_b, nd = g_ref.shape
    n_chunks = tile_b // chunk          # static; wrapper guarantees divisibility

    # Constant 0/1 "segment sum" matrix: column n selects candidate n's D
    # features, so (chunk, N*D) @ (N*D, N) reduces over D on the MXU while the
    # data stays lane-major (no in-kernel reshape of the big block).
    k_idx = jax.lax.broadcasted_iota(jnp.int32, (nd, n_cand), 0)
    n_idx = jax.lax.broadcasted_iota(jnp.int32, (nd, n_cand), 1)
    seg = ((k_idx >= n_idx * dim) & (k_idx < (n_idx + 1) * dim)).astype(jnp.float32)

    row0 = pl.program_id(0) * tile_b    # global row index of this tile's start

    def compute_chunk(start):
        g = g_ref[pl.ds(start, chunk), :].astype(jnp.float32)          # (chunk, N*D)
        s = s_ref[pl.ds(start, chunk), :].astype(jnp.float32)

        w12 = jnp.dot(g * s, seg, preferred_element_type=jnp.float32)  # (chunk, N)
        w1 = jnp.dot(g * g, seg, preferred_element_type=jnp.float32)
        w2 = jnp.dot(s * s, seg, preferred_element_type=jnp.float32)

        inv_norm = jax.lax.rsqrt(jnp.maximum(w1 * w2, _EPS * _EPS))
        sim = w12 * inv_norm * inv_temperature                          # (chunk, N)

        # Exact, stabilized  -log(exp(sim0)/sum(exp(sim))) = logsumexp(sim) - sim0
        m = jnp.max(sim, axis=-1, keepdims=True)
        lse = jnp.log(jnp.sum(jnp.exp(sim - m), axis=-1, keepdims=True)) + m
        loss = lse - sim[:, 0:1]                                        # (chunk, 1)

        # Zero rows past the real batch (ragged final tile reads garbage HBM/VMEM).
        rows = row0 + start + jax.lax.broadcasted_iota(jnp.int32, (chunk, 1), 0)
        loss = jnp.where(rows < batch, loss, 0.0)
        loss_ref[pl.ds(start, chunk), :] = loss

    if n_chunks == 1:
        compute_chunk(0)
    else:
        def body(c, carry):
            compute_chunk(pl.multiple_of(c * chunk, chunk))
            return carry
        jax.lax.fori_loop(0, n_chunks, body, 0)


def _choose_tiling(batch, row_bytes, tile_b):
    """Pick (tile_b rows per grid step, chunk rows per inner compute step)."""
    if tile_b is None:
        tile_b = max(1, _TARGET_BLOCK_BYTES // row_bytes)
    tile_b = min(int(tile_b), batch)
    if tile_b >= _CHUNK:
        tile_b -= tile_b % _CHUNK       # exact inner chunking, sublane aligned
        chunk = _CHUNK
    else:
        if tile_b >= 8:
            tile_b -= tile_b % 8        # keep sublane alignment when possible
        chunk = tile_b
    # If a large batch landed in a single tile, split it so a v7x megacore can
    # run the halves on its two TensorCores (and DMA/compute can pipeline).
    if tile_b == batch and batch >= 2 * _CHUNK:
        half = -(-batch // 2)
        tile_b = _round_up(half, _CHUNK)
        chunk = _CHUNK
    return max(tile_b, 1), max(chunk, 1)


def infonce_loss(graph_out, sent_out, temperature, *, tile_b=None):
    """graph_out, sent_out: [B, N, D]. Returns the scalar mean InfoNCE loss."""
    assert graph_out.shape == sent_out.shape and graph_out.ndim == 3
    B, N, D = graph_out.shape
    ND = N * D

    # Lane-dense, fully contiguous view of each example (free reshape in HBM).
    g2 = graph_out.reshape(B, ND)
    s2 = sent_out.reshape(B, ND)

    itemsize = jnp.dtype(graph_out.dtype).itemsize
    row_bytes = _round_up(ND, 128) * itemsize          # lane-padded VMEM bytes/row
    tile_b, chunk = _choose_tiling(B, row_bytes, tile_b)
    num_tiles = pl.cdiv(B, tile_b)

    kernel = functools.partial(
        _infonce_kernel,
        inv_temperature=1.0 / float(temperature),
        n_cand=N, dim=D, batch=B, chunk=chunk)

    per_example = pl.pallas_call(
        kernel,
        out_shape=jax.ShapeDtypeStruct((num_tiles * tile_b, 1), jnp.float32),
        grid_spec=pltpu.PrefetchScalarGridSpec(
            num_scalar_prefetch=0,
            grid=(num_tiles,),
            in_specs=[
                pl.BlockSpec((tile_b, ND), lambda i: (i, 0)),
                pl.BlockSpec((tile_b, ND), lambda i: (i, 0)),
            ],
            out_specs=pl.BlockSpec((tile_b, 1), lambda i: (i, 0)),
        ),
        compiler_params=pltpu.CompilerParams(
            dimension_semantics=("parallel",),   # independent tiles (megacore OK)
            vmem_limit_bytes=_VMEM_LIMIT,
        ),
    )(g2, s2)

    # Tiny final reduction over the real B examples (padded rows are zeros).
    return jnp.sum(per_example[:B, 0]) / B


def _reference_loss(graph_out, sent_out, temperature):
    g = graph_out.astype(jnp.float32)
    s = sent_out.astype(jnp.float32)
    w12 = jnp.sum(g * s, axis=-1)
    w1 = jnp.sum(g * g, axis=-1)
    w2 = jnp.sum(s * s, axis=-1)
    sim = w12 / jnp.sqrt(jnp.maximum(w1 * w2, _EPS * _EPS)) / temperature
    exp_t = jnp.exp(sim)                                     # (B, N)
    loss = -jnp.log(exp_t[:, 0] / jnp.sum(exp_t, axis=-1))   # (B,)
    return jnp.mean(loss)


if __name__ == "__main__":
    temperature = 0.5
    k0, k1, k2, k3 = jax.random.split(jax.random.PRNGKey(0), 4)

    # Small shapes consistent with the module: B examples of N candidates, D feats.
    B, N, D = 2, 8, 32
    graph_out = jax.random.normal(k0, (B, N, D), dtype=jnp.float32)
    sent_out = jax.random.normal(k1, (B, N, D), dtype=jnp.float32)

    loss = infonce_loss(graph_out, sent_out, temperature)
    jax.block_until_ready(loss)
    ref = _reference_loss(graph_out, sent_out, temperature)
    assert jnp.allclose(loss, ref, rtol=1e-5, atol=1e-5), (loss, ref)

    # Multi-tile path with a ragged last tile (B % tile_b != 0 -> in-kernel mask).
    B2 = 20
    g2 = jax.random.normal(k2, (B2, N, D), dtype=jnp.float32)
    s2 = jax.random.normal(k3, (B2, N, D), dtype=jnp.float32)
    loss2 = infonce_loss(g2, s2, temperature, tile_b=8)
    jax.block_until_ready(loss2)
    ref2 = _reference_loss(g2, s2, temperature)
    assert jnp.allclose(loss2, ref2, rtol=1e-5, atol=1e-5), (loss2, ref2)

    # bf16 inputs go straight into the kernel (upcast to f32 in-kernel).
    g3 = g2.astype(jnp.bfloat16)
    s3 = s2.astype(jnp.bfloat16)
    loss3 = infonce_loss(g3, s3, temperature)
    jax.block_until_ready(loss3)
    ref3 = _reference_loss(g3, s3, temperature)
    assert jnp.allclose(loss3, ref3, rtol=1e-5, atol=1e-5), (loss3, ref3)

    print("KERNEL_OK")
</pallas_src>

<mosaic_0001>
module attributes {stable_mosaic.version = 11 : i64} {
  func.func @_infonce_kernel(%arg0: i32, %arg1: memref<2x256xf32, #tpu.memory_space<vmem>>, %arg2: memref<2x256xf32, #tpu.memory_space<vmem>>, %arg3: memref<2x1xf32, #tpu.memory_space<vmem>>) attributes {dimension_semantics = [#tpu.dimension_semantics<parallel>], iteration_bounds = array<i64: 1>, scalar_prefetch = 0 : i64, scratch_operands = 0 : i64, tpu.core_type = #tpu.core_type<tc>, window_params = [{transform_indices = @transform_0, window_bounds = array<i64: 2, 256>}, {transform_indices = @transform_1, window_bounds = array<i64: 2, 256>}, {transform_indices = @transform_2, window_bounds = array<i64: 2, 1>}]} {
    %0 = tpu.iota {dimensions = array<i32: 0>} : vector<256x8xi32>
    %1 = tpu.iota {dimensions = array<i32: 1>} : vector<256x8xi32>
    %c32_i32 = arith.constant 32 : i32
    %2 = vector.broadcast %c32_i32 : i32 to vector<256x8xi32>
    %3 = arith.muli %1, %2 : vector<256x8xi32>
    %4 = arith.cmpi sge, %0, %3 : vector<256x8xi32>
    %c1_i32 = arith.constant 1 : i32
    %5 = vector.broadcast %c1_i32 : i32 to vector<256x8xi32>
    %6 = arith.addi %1, %5 : vector<256x8xi32>
    %c32_i32_0 = arith.constant 32 : i32
    %7 = vector.broadcast %c32_i32_0 : i32 to vector<256x8xi32>
    %8 = arith.muli %6, %7 : vector<256x8xi32>
    %9 = arith.cmpi slt, %0, %8 : vector<256x8xi32>
    %10 = arith.andi %4, %9 : vector<256x8xi1>
    %11 = arith.extui %10 : vector<256x8xi1> to vector<256x8xi32>
    %12 = arith.sitofp %11 : vector<256x8xi32> to vector<256x8xf32>
    %c2_i32 = arith.constant 2 : i32
    %13 = arith.muli %arg0, %c2_i32 : i32
    %c0 = arith.constant 0 : index
    %c0_1 = arith.constant 0 : index
    %14 = vector.load %arg1[%c0, %c0_1] : memref<2x256xf32, #tpu.memory_space<vmem>>, vector<2x256xf32>
    %c0_2 = arith.constant 0 : index
    %c0_3 = arith.constant 0 : index
    %15 = vector.load %arg2[%c0_2, %c0_3] : memref<2x256xf32, #tpu.memory_space<vmem>>, vector<2x256xf32>
    %16 = arith.mulf %14, %15 : vector<2x256xf32>
    %cst = arith.constant dense<0.000000e+00> : vector<2x8xf32>
    %17 = tpu.matmul %16, %12, %cst {dimension_numbers = #tpu.dot_dimension_numbers<[1], [0], [0], [1], [0, 0, 1, 1], [], []>} : vector<2x256xf32>, vector<256x8xf32>, vector<2x8xf32> -> vector<2x8xf32>
    %18 = arith.mulf %14, %14 : vector<2x256xf32>
    %cst_4 = arith.constant dense<0.000000e+00> : vector<2x8xf32>
    %19 = tpu.matmul %18, %12, %cst_4 {dimension_numbers = #tpu.dot_dimension_numbers<[1], [0], [0], [1], [0, 0, 1, 1], [], []>} : vector<2x256xf32>, vector<256x8xf32>, vector<2x8xf32> -> vector<2x8xf32>
    %20 = arith.mulf %15, %15 : vector<2x256xf32>
    %cst_5 = arith.constant dense<0.000000e+00> : vector<2x8xf32>
    %21 = tpu.matmul %20, %12, %cst_5 {dimension_numbers = #tpu.dot_dimension_numbers<[1], [0], [0], [1], [0, 0, 1, 1], [], []>} : vector<2x256xf32>, vector<256x8xf32>, vector<2x8xf32> -> vector<2x8xf32>
    %22 = arith.mulf %19, %21 : vector<2x8xf32>
    %cst_6 = arith.constant 1.000000e-16 : f32
    %23 = vector.broadcast %cst_6 : f32 to vector<2x8xf32>
    %24 = arith.maximumf %22, %23 : vector<2x8xf32>
    %25 = math.rsqrt %24 : vector<2x8xf32>
    %26 = arith.mulf %17, %25 : vector<2x8xf32>
    %cst_7 = arith.constant 2.000000e+00 : f32
    %27 = vector.broadcast %cst_7 : f32 to vector<2x8xf32>
    %28 = arith.mulf %26, %27 : vector<2x8xf32>
    %cst_8 = arith.constant dense<0xFF800000> : vector<2xf32>
    %29 = vector.multi_reduction <maximumf>, %28, %cst_8 [1] : vector<2x8xf32> to vector<2xf32>
    %30 = vector.shape_cast %29 : vector<2xf32> to vector<2x1xf32>
    %31 = vector.broadcast %30 : vector<2x1xf32> to vector<2x8xf32>
    %32 = arith.subf %28, %31 : vector<2x8xf32>
    %33 = math.exp %32 : vector<2x8xf32>
    %cst_9 = arith.constant dense<0.000000e+00> : vector<2xf32>
    %34 = vector.multi_reduction <add>, %33, %cst_9 [1] : vector<2x8xf32> to vector<2xf32>
    %35 = vector.shape_cast %34 : vector<2xf32> to vector<2x1xf32>
    %36 = math.log %35 : vector<2x1xf32>
    %37 = arith.addf %36, %30 : vector<2x1xf32>
    %38 = vector.extract_strided_slice %28 {offsets = [0, 0], sizes = [2, 1], strides = [1, 1]} : vector<2x8xf32> to vector<2x1xf32>
    %39 = arith.subf %37, %38 : vector<2x1xf32>
    %c0_i32 = arith.constant 0 : i32
    %40 = arith.addi %13, %c0_i32 : i32
    %41 = tpu.iota {dimensions = array<i32: 0>} : vector<2x1xi32>
    %42 = vector.broadcast %40 : i32 to vector<2x1xi32>
    %43 = arith.addi %42, %41 : vector<2x1xi32>
    %c2_i32_10 = arith.constant 2 : i32
    %44 = vector.broadcast %c2_i32_10 : i32 to vector<2x1xi32>
    %45 = arith.cmpi slt, %43, %44 : vector<2x1xi32>
    %cst_11 = arith.constant 0.000000e+00 : f32
    %46 = vector.broadcast %cst_11 : f32 to vector<2x1xf32>
    %47 = arith.select %45, %39, %46 : vector<2x1xi1>, vector<2x1xf32>
    %c0_12 = arith.constant 0 : index
    %c0_13 = arith.constant 0 : index
    %48 = vector.load %arg3[%c0_12, %c0_13] : memref<2x1xf32, #tpu.memory_space<vmem>>, vector<2x1xf32>
    tpu.vector_store %arg3[%c0_12, %c0_13], %47 {strides = array<i32>} : memref<2x1xf32, #tpu.memory_space<vmem>>, vector<2x1xf32>,
    return
  }
  func.func @transform_0(%arg0: i32) -> (i32, i32) {
    %c0_i32 = arith.constant 0 : i32
    %c0_i32_0 = arith.constant 0 : i32
    return %arg0, %c0_i32 : i32, i32
  }
  func.func @transform_1(%arg0: i32) -> (i32, i32) {
    %c0_i32 = arith.constant 0 : i32
    %c0_i32_0 = arith.constant 0 : i32
    return %arg0, %c0_i32 : i32, i32
  }
  func.func @transform_2(%arg0: i32) -> (i32, i32) {
    %c0_i32 = arith.constant 0 : i32
    %c0_i32_0 = arith.constant 0 : i32
    return %arg0, %c0_i32 : i32, i32
  }
}

</mosaic_0001>

<bundles_post_ra>
// kernel: tpu_custom_call.1
= control target key start
LH: loop header
LB: loop body
LE: loop exit
PB: predicated region body
PF: predicated region fallthrough
CT: control target
= control target key end

     0   :  { %7 = vsyncpa [#allocation3], 0  ;;  %s1283_s0 = inlined_call_operand.hbm [shape: f32[2,256], index: 0, kind: input, shape index: {}]   ;;  %s1284_s1 = inlined_call_operand.hbm [shape: f32[2,256], index: 1, kind: input, shape index: {}]   ;;  %s1285_s2 = inlined_call_operand.vmem [shape: f32[2,1], index: 2, kind: output, shape index: {}]  }
   0x1   :  { %8 = vsyncpa [#allocation5], 0  ;;  %s900_s9 = smov [#allocation2]   ;;  %s901_s11 = smov [#allocation4]  }
   0x2   :  { %s15_s10 = sshll.u32 %s900_s9, 4  ;;  %s25_s12 = sshll.u32 %s901_s11, 4  ;;  %s16_s10 = int_to_ptr.vmem [resolvable:$true] %s15_s10  ;;  %s26_s12 = int_to_ptr.vmem [resolvable:$true] %s25_s12 }
   0x3   :  { %s852_s15 = scalar_lea.hbm %s1283_s0, 64 }
   0x4   :  { %p853_p0 = scmp.ne.s32.totalorder %s1283_s0, %s852_s15  ;;  %p856_p1 = scmp.lt.u32.totalorder %s852_s15, %s1283_s0 }
   0x6   :  { %p858_p2 = pnand %p856_p1, %p853_p0 }
   0x8   :  { %861 = shalt.err (!%p858_p2)
}
   0x9   :  { %s862_s20 = scalar_lea.vmem %s16_s10, 64  ;;  %p867_p4 = scmp.lt.s32.totalorder %s16_s10, %s16_s10 }
   0xa   :  { %p863_p3 = scmp.ne.s32.totalorder %s16_s10, %s862_s20  ;;  %p868_p5 = scmp.lt.s32.totalorder %s862_s20, %s862_s20 }
   0xc   :  { %p869_p6 = por %p868_p5, %p867_p4 }
   0xe   :  { %p870_p7 = pnand %p869_p6, %p863_p3 }
  0x10   :  { %873 = shalt.err (!%p870_p7)
}
  0x11   :  { %18 = dma.hbm_to_vmem [thread:$0]  %s1283_s0, 64, %s16_s10, [#allocation3]  }
  0x12   :  { %s874_s25 = scalar_lea.hbm %s1284_s1, 64 }
  0x13   :  { %p875_p8 = scmp.ne.s32.totalorder %s1284_s1, %s874_s25  ;;  %p878_p9 = scmp.lt.u32.totalorder %s874_s25, %s1284_s1 }
  0x15   :  { %p880_p10 = pnand %p878_p9, %p875_p8 }
  0x17   :  { %883 = shalt.err (!%p880_p10)
}
  0x18   :  { %s884_s30 = scalar_lea.vmem %s26_s12, 64  ;;  %p889_p12 = scmp.lt.s32.totalorder %s26_s12, %s26_s12 }
  0x19   :  { %p885_p11 = scmp.ne.s32.totalorder %s26_s12, %s884_s30  ;;  %p890_p13 = scmp.lt.s32.totalorder %s884_s30, %s884_s30 }
  0x1b   :  { %p891_p0 = por %p890_p13, %p889_p12 }
  0x1d   :  { %p892_p1 = pnand %p891_p0, %p885_p11 }
  0x1f   :  { %895 = shalt.err (!%p892_p1)
}
  0x20   :  { %28 = dma.hbm_to_vmem [thread:$0]  %s1284_s1, 64, %s26_s12, [#allocation5]  }
  0x21   :  { %896 = dma.done.wait [#allocation3], 64  }
  0x22   :  { %897 = vsyncadd [#allocation3], 4294967232  ;;  %v35_v0 = vlaneseq }
  0x23   :  { %898 = dma.done.wait [#allocation5], 64  }
  0x24   :  { %899 = vsyncadd [#allocation5], 4294967232  ;;  %v943_v1 = vshrl.u32 %v35_v0, 7  ;;  %v69_v2 = vand.u32 127, %v35_v0  ;;  %v902_v13 = vmov 1.0|1.0  }
  0x25   :  { %v903_v21 = vmov 1983009808   ;;  %v1303_v27 = vmov 0  ;;  %v234_v30 = vld [vmem:[#allocation2] sm:$0xf]  ;;  %v1305_v33 = vmov 0 }
  0x26   :  { %v52_v3 = vadd.s32 128, %v943_v1  ;;  %v53_v4 = vadd.s32 136, %v943_v1  ;;  %v947_v5 = vmul.u32 32, %v69_v2  ;;  %v103_v6 = vadd.s32 1, %v69_v2  ;;  %v1039_v31 = vld [vmem:[#allocation4] sm:$0xf] }
  0x27   :  { %v37_v8 = vadd.s32 8, %v943_v1  ;;  %v54_v9 = vadd.s32 144, %v943_v1  ;;  %v55_v10 = vadd.s32 152, %v943_v1  ;;  %v38_v12 = vadd.s32 16, %v943_v1 }
  0x28   :  { %vm87_vm0 = vcmp.ge.s32.totalorder %v52_v3, %v947_v5  ;;  %v950_v7 = vmul.u32 32, %v103_v6  ;;  %vm88_vm1 = vcmp.ge.s32.totalorder %v53_v4, %v947_v5  ;;  %vm71_vm5 = vcmp.ge.s32.totalorder %v943_v1, %v947_v5 }
  0x29   :  { %vm72_vm8 = vcmp.ge.s32.totalorder %v37_v8, %v947_v5  ;;  %vm89_vm12 = vcmp.ge.s32.totalorder %v54_v9, %v947_v5  ;;  %v39_v14 = vadd.s32 24, %v943_v1  ;;  %vm90_vm15 = vcmp.ge.s32.totalorder %v55_v10, %v947_v5 }
  0x2a   :  { %vm121_vm2 = vcmp.lt.s32.totalorder %v52_v3, %v950_v7  ;;  %vm122_vm3 = vcmp.lt.s32.totalorder %v53_v4, %v950_v7  ;;  %vm105_vm6 = vcmp.lt.s32.totalorder %v943_v1, %v950_v7  ;;  %vm106_vm9 = vcmp.lt.s32.totalorder %v37_v8, %v950_v7 }
  0x2b   :  { %vm153_vm4 = vmand %vm87_vm0, %vm121_vm2  ;;  %vm123_vm13 = vcmp.lt.s32.totalorder %v54_v9, %v950_v7  ;;  %vm124_vm0 = vcmp.lt.s32.totalorder %v55_v10, %v950_v7  ;;  %v56_v16 = vadd.s32 160, %v943_v1  ;;  %v57_v17 = vadd.s32 168, %v943_v1 }
  0x2c   :  { %vm154_vm7 = vmand %vm88_vm1, %vm122_vm3  ;;  %vm73_vm3 = vcmp.ge.s32.totalorder %v38_v12, %v947_v5  ;;  %v40_v19 = vadd.s32 32, %v943_v1  ;;  %v41_v20 = vadd.s32 40, %v943_v1  ;;  %v239_v22 = vunpack.c.l.s4 %v903_v21 }
  0x2d   :  { %vm964_vm10 = vmpackc.low %vm154_vm7, %vm153_vm4  ;;  %vm107_vm4 = vcmp.lt.s32.totalorder %v38_v12, %v950_v7  ;;  %vm108_vm7 = vcmp.lt.s32.totalorder %v39_v14, %v950_v7  ;;  %v58_v24 = vadd.s32 176, %v943_v1  ;;  %v59_v25 = vadd.s32 184, %v943_v1 }
  0x2e   :  { %747 = vmatprep.subr.msk.bf16.mxu0 %vm964_vm10, %v902_v13  ;;  %vm137_vm11 = vmand %vm71_vm5, %vm105_vm6  ;;  %779 = vmatprep.subr.msk.bf16.mxu1 %vm964_vm10, %v902_v13  ;;  %vm74_vm6 = vcmp.ge.s32.totalorder %v39_v14, %v947_v5  ;;  %v42_v26 = vadd.s32 48, %v943_v1  ;;  %v240_v28 = vunpack.c.0.s8 %v239_v22  ;;  %v43_v29 = vadd.s32 56, %v943_v1 }
  0x2f   :  { %vm138_vm14 = vmand %vm72_vm8, %vm106_vm9  ;;  %v60_v32 = vadd.s32 192, %v943_v1  ;;  %v61_v34 = vadd.s32 200, %v943_v1  ;;  %v236_v35 = vmul.f32 %v1039_v31, %v234_v30  ;;  %v318_v37 = vmul.f32 %v234_v30, %v234_v30 }
  0x30   :  { %vm980_vm1 = vmpackc.low %vm138_vm14, %vm137_vm11  ;;  %vm91_vm11 = vcmp.ge.s32.totalorder %v56_v16, %v947_v5  ;;  %vm92_vm14 = vcmp.ge.s32.totalorder %v57_v17, %v947_v5  ;;  %v1059_v36 = vsub.s32 %v240_v28, %v943_v1  ;;  %v1307_v38 = vmov 0 }
  0x31   :  { %749 = vmatpush3.bf16.msk.msra.mxu0 %vm980_vm1, %v902_v13  ;;  %vm155_vm2 = vmand %vm89_vm12, %vm123_vm13  ;;  %781 = vmatpush3.bf16.msk.msra.mxu1 %vm980_vm1, %v902_v13  ;;  %vm125_vm12 = vcmp.lt.s32.totalorder %v56_v16, %v950_v7  ;;  %v44_v39 = vadd.s32 64, %v943_v1  ;;  %v45_v40 = vadd.s32 72, %v943_v1  ;;  %v1309_v43 = vmov 0 }
  0x32   :  { %vm156_vm5 = vmand %vm90_vm15, %vm124_vm0  ;;  %vm126_vm15 = vcmp.lt.s32.totalorder %v57_v17, %v950_v7  ;;  %v1080_v41 = vrot.slane %v236_v35, %v1059_v36  ;;  %v1086_v42 = vrot.slane %v318_v37, %v1059_v36  ;;  %v62_v44 = vadd.s32 208, %v943_v1 }
  0x33   :  { %vm996_vm8 = vmpackc.low %vm156_vm5, %vm155_vm2  ;;  %v63_v47 = vadd.s32 216, %v943_v1  ;;  %v1312_v48 = vmov 0  ;;  %v46_v49 = vadd.s32 80, %v943_v1  ;;  %v47_v50 = vadd.s32 88, %v943_v1 }
  0x34   :  { %751 = vmatprep.subr.msk.bf16.mxu0 %vm996_vm8, %v902_v13  ;;  %vm139_vm9 = vmand %vm73_vm3, %vm107_vm4  ;;  %783 = vmatprep.subr.msk.bf16.mxu1 %vm996_vm8, %v902_v13  ;;  %vm75_vm3 = vcmp.ge.s32.totalorder %v40_v19, %v947_v5  ;;  %vm109_vm4 = vcmp.lt.s32.totalorder %v40_v19, %v950_v7  ;;  %v245_v45 = vcombine.high %v1080_v41, %v1080_v41  ;;  %v1314_v51 = vmov 0 }
  0x35   :  { %vm140_vm13 = vmand %vm74_vm6, %vm108_vm7  ;;  %vm76_vm6 = vcmp.ge.s32.totalorder %v41_v20, %v947_v5  ;;  %vm110_vm7 = vcmp.lt.s32.totalorder %v41_v20, %v950_v7  ;;  %v327_v46 = vcombine.high %v1086_v42, %v1086_v42  ;;  %v64_v52 = vadd.s32 224, %v943_v1 }
  0x36   :  { %vm1012_vm0 = vmpackc.low %vm140_vm13, %vm139_vm9  ;;  %vm127_vm13 = vcmp.lt.s32.totalorder %v58_v24, %v950_v7  ;;  %312 = vmatprep.mubr.f32.mxu0 %v245_v45  ;;  %v65_v53 = vadd.s32 232, %v943_v1  ;;  %v1316_v54 = vmov 0  ;;  %v48_v55 = vadd.s32 96, %v943_v1 }
  0x37   :  { %753 = vmatpush3.bf16.msk.msra.mxu0 %vm1012_vm0, %v902_v13  ;;  %vm157_vm2 = vmand %vm91_vm11, %vm125_vm12  ;;  %785 = vmatpush3.bf16.msk.msra.mxu1 %vm1012_vm0, %v902_v13  ;;  %vm93_vm12 = vcmp.ge.s32.totalorder %v58_v24, %v947_v5  ;;  %v49_v56 = vadd.s32 104, %v943_v1  ;;  %v1318_v57 = vmov 0  ;;  %v66_v58 = vadd.s32 240, %v943_v1 }
  0x38   :  { %vm158_vm5 = vmand %vm92_vm14, %vm126_vm15  ;;  %vm94_vm15 = vcmp.ge.s32.totalorder %v59_v25, %v947_v5  ;;  %394 = vmatprep.mubr.f32.mxu1 %v327_v46  ;;  %v67_v59 = vadd.s32 248, %v943_v1  ;;  %v1320_v60 = vmov 0  ;;  %v50_v61 = vadd.s32 112, %v943_v1 }
  0x39   :  { %vm1029_vm9 = vmpackc.low %vm158_vm5, %vm157_vm2  ;;  %vm128_vm2 = vcmp.lt.s32.totalorder %v59_v25, %v950_v7  ;;  %v51_v62 = vadd.s32 120, %v943_v1  ;;  %v400_v63 = vmul.f32 %v1039_v31, %v1039_v31 }
  0x3a   :  { %v1304_v27 = vsel %vm1029_vm9, 4294967295, %v1303_v27  ;;  %755 = vmatprep.subr.msk.bf16.mxu0 %vm1029_vm9, %v902_v13  ;;  %vm141_vm11 = vmand %vm75_vm3, %vm109_vm4  ;;  %787 = vmatprep.subr.msk.bf16.mxu1 %vm1029_vm9, %v902_v13  ;;  %vm77_vm4 = vcmp.ge.s32.totalorder %v42_v26, %v947_v5 }
  0x3b   :  { %vm142_vm14 = vmand %vm76_vm6, %vm110_vm7  ;;  %vm111_vm6 = vcmp.lt.s32.totalorder %v42_v26, %v950_v7  ;;  %v408_v3 = vrot.slane %v400_v63, %v1059_v36 }
  0x3c   :  { %vm1047_vm3 = vmpackc.low %vm142_vm14, %vm141_vm11  ;;  %vm78_vm11 = vcmp.ge.s32.totalorder %v43_v29, %v947_v5  ;;  %vm112_vm14 = vcmp.lt.s32.totalorder %v43_v29, %v950_v7 }
  0x3d   :  { %v1306_v33 = vsel %vm1047_vm3, 4294967295, %v1305_v33  ;;  %757 = vmatpush3.bf16.msk.msra.mxu0 %vm1047_vm3, %v902_v13  ;;  %vm159_vm5 = vmand %vm93_vm12, %vm127_vm13  ;;  %789 = vmatpush3.bf16.msk.msra.mxu1 %vm1047_vm3, %v902_v13  ;;  %vm130_vm13 = vcmp.lt.s32.totalorder %v61_v34, %v950_v7  ;;  %vm114_vm3 = vcmp.lt.s32.totalorder %v45_v40, %v950_v7 }
  0x3e   :  { %vm160_vm7 = vmand %vm94_vm15, %vm128_vm2  ;;  %vm129_vm2 = vcmp.lt.s32.totalorder %v60_v32, %v950_v7 }
  0x3f   :  { %vm1066_vm12 = vmpackc.low %vm160_vm7, %vm159_vm5  ;;  %vm96_vm7 = vcmp.ge.s32.totalorder %v61_v34, %v947_v5 }
  0x40   :  { %v1308_v38 = vsel %vm1066_vm12, 4294967295, %v1307_v38  ;;  %759 = vmatprep.subr.msk.bf16.mxu0 %vm1066_vm12, %v902_v13  ;;  %vm143_vm15 = vmand %vm77_vm4, %vm111_vm6  ;;  %791 = vmatprep.subr.msk.bf16.mxu1 %vm1066_vm12, %v902_v13  ;;  %vm1311_vm6 = vcmp.ge.s32.totalorder %v60_v32, %v947_v5  ;;  %vm80_vm12 = vcmp.ge.s32.totalorder %v45_v40, %v947_v5 }
  0x41   :  { %vm144_vm5 = vmand %vm78_vm11, %vm112_vm14  ;;  %vm79_vm14 = vcmp.ge.s32.totalorder %v44_v39, %v947_v5 }
  0x42   :  { %vm1090_vm4 = vmpackc.low %vm144_vm5, %vm143_vm15  ;;  %vm113_vm15 = vcmp.lt.s32.totalorder %v44_v39, %v950_v7 }
  0x43   :  { %v1310_v43 = vsel %vm1090_vm4, 4294967295, %v1309_v43  ;;  %761 = vmatpush3.bf16.msk.msra.mxu0 %vm1090_vm4, %v902_v13  ;;  %vm161_vm11 = vmand %vm1311_vm6, %vm129_vm2  ;;  %793 = vmatpush3.bf16.msk.msra.mxu1 %vm1090_vm4, %v902_v13  ;;  %vm97_vm6 = vcmp.ge.s32.totalorder %v62_v44, %v947_v5 }
  0x44   :  { %vm162_vm5 = vmand %vm96_vm7, %vm130_vm13  ;;  %vm131_vm13 = vcmp.lt.s32.totalorder %v62_v44, %v950_v7 }
  0x45   :  { %vm1112_vm9 = vmpackc.low %vm162_vm5, %vm161_vm11  ;;  %vm98_vm11 = vcmp.ge.s32.totalorder %v63_v47, %v947_v5  ;;  %vm132_vm5 = vcmp.lt.s32.totalorder %v63_v47, %v950_v7 }
  0x46   :  { %v1313_v48 = vsel %vm1112_vm9, 4294967295, %v1312_v48  ;;  %763 = vmatprep.subr.msk.bf16.mxu0 %vm1112_vm9, %v902_v13  ;;  %vm145_vm2 = vmand %vm79_vm14, %vm113_vm15  ;;  %795 = vmatprep.subr.msk.bf16.mxu1 %vm1112_vm9, %v902_v13  ;;  %vm81_vm15 = vcmp.ge.s32.totalorder %v46_v49, %v947_v5  ;;  %vm115_vm9 = vcmp.lt.s32.totalorder %v46_v49, %v950_v7 }
  0x47   :  { %vm146_vm7 = vmand %vm80_vm12, %vm114_vm3  ;;  %vm82_vm12 = vcmp.ge.s32.totalorder %v47_v50, %v947_v5 }
  0x48   :  { %vm1128_vm4 = vmpackc.low %vm146_vm7, %vm145_vm2  ;;  %vm116_vm2 = vcmp.lt.s32.totalorder %v47_v50, %v950_v7 }
  0x49   :  { %v1315_v51 = vsel %vm1128_vm4, 4294967295, %v1314_v51  ;;  %765 = vmatpush3.bf16.msk.msra.mxu0 %vm1128_vm4, %v902_v13  ;;  %vm163_vm14 = vmand %vm97_vm6, %vm131_vm13  ;;  %797 = vmatpush3.bf16.msk.msra.mxu1 %vm1128_vm4, %v902_v13  ;;  %vm99_vm13 = vcmp.ge.s32.totalorder %v64_v52, %v947_v5  ;;  %vm133_vm4 = vcmp.lt.s32.totalorder %v64_v52, %v950_v7 }
  0x4a   :  { %vm164_vm3 = vmand %vm98_vm11, %vm132_vm5  ;;  %vm100_vm5 = vcmp.ge.s32.totalorder %v65_v53, %v947_v5 }
  0x4b   :  { %vm1144_vm7 = vmpackc.low %vm164_vm3, %vm163_vm14  ;;  %vm134_vm14 = vcmp.lt.s32.totalorder %v65_v53, %v950_v7 }
  0x4c   :  { %v1317_v54 = vsel %vm1144_vm7, 4294967295, %v1316_v54  ;;  %767 = vmatprep.subr.msk.bf16.mxu0 %vm1144_vm7, %v902_v13  ;;  %vm147_vm6 = vmand %vm81_vm15, %vm115_vm9  ;;  %799 = vmatprep.subr.msk.bf16.mxu1 %vm1144_vm7, %v902_v13  ;;  %vm83_vm15 = vcmp.ge.s32.totalorder %v48_v55, %v947_v5  ;;  %vm117_vm7 = vcmp.lt.s32.totalorder %v48_v55, %v950_v7 }
  0x4d   :  { %vm148_vm11 = vmand %vm82_vm12, %vm116_vm2  ;;  %vm84_vm2 = vcmp.ge.s32.totalorder %v49_v56, %v947_v5 }
  0x4e   :  { %vm1160_vm3 = vmpackc.low %vm148_vm11, %vm147_vm6  ;;  %vm118_vm6 = vcmp.lt.s32.totalorder %v49_v56, %v950_v7 }
  0x4f   :  { %v1319_v57 = vsel %vm1160_vm3, 4294967295, %v1318_v57  ;;  %769 = vmatpush3.bf16.msk.msra.mxu0 %vm1160_vm3, %v902_v13  ;;  %vm165_vm9 = vmand %vm99_vm13, %vm133_vm4  ;;  %801 = vmatpush3.bf16.msk.msra.mxu1 %vm1160_vm3, %v902_v13  ;;  %vm101_vm13 = vcmp.ge.s32.totalorder %v66_v58, %v947_v5  ;;  %vm135_vm3 = vcmp.lt.s32.totalorder %v66_v58, %v950_v7 }
  0x50   :  { %vm166_vm12 = vmand %vm100_vm5, %vm134_vm14  ;;  %vm102_vm14 = vcmp.ge.s32.totalorder %v67_v59, %v947_v5 }
  0x51   :  { %vm1176_vm11 = vmpackc.low %vm166_vm12, %vm165_vm9  ;;  %vm136_vm9 = vcmp.lt.s32.totalorder %v67_v59, %v950_v7 }
  0x52   :  { %v1321_v60 = vsel %vm1176_vm11, 4294967295, %v1320_v60  ;;  %771 = vmatprep.subr.msk.bf16.mxu0 %vm1176_vm11, %v902_v13  ;;  %vm149_vm4 = vmand %vm83_vm15, %vm117_vm7  ;;  %803 = vmatprep.subr.msk.bf16.mxu1 %vm1176_vm11, %v902_v13  ;;  %vm85_vm15 = vcmp.ge.s32.totalorder %v50_v61, %v947_v5  ;;  %vm86_vm11 = vcmp.ge.s32.totalorder %v51_v62, %v947_v5  ;;  %v409_v5 = vcombine.high %v408_v3, %v408_v3 }
  0x53   :  { %vm150_vm5 = vmand %vm84_vm2, %vm118_vm6  ;;  %vm119_vm2 = vcmp.lt.s32.totalorder %v50_v61, %v950_v7 }
  0x54   :  { %vm1194_vm12 = vmpackc.low %vm150_vm5, %vm149_vm4  ;;  %vm120_vm4 = vcmp.lt.s32.totalorder %v51_v62, %v950_v7 }
  0x55   :  { %773 = vmatpush3.bf16.msk.msra.mxu0 %vm1194_vm12, %v902_v13  ;;  %vm167_vm7 = vmand %vm101_vm13, %vm135_vm3  ;;  %805 = vmatpush3.bf16.msk.msra.mxu1 %vm1194_vm12, %v902_v13 }
  0x56   :  { %vm168_vm6 = vmand %vm102_vm14, %vm136_vm9  ;;  %vm1331_vm9 = vnez %v1310_v43 }
  0x57   :  { %vm1208_vm5 = vmpackc.low %vm168_vm6, %vm167_vm7  ;;  %vm1334_vm7 = vnez %v1317_v54  ;;  %vm503_vm6 = vcmp.lt.s32.totalorder %v943_v1, 2 }
  0x58   :  { %775 = vmatprep.subr.msk.bf16.mxu0 %vm1208_vm5, %v902_v13  ;;  %vm151_vm3 = vmand %vm85_vm15, %vm119_vm2  ;;  %807 = vmatprep.subr.msk.bf16.mxu1 %vm1208_vm5, %v902_v13  ;;  %vm1335_vm15 = vnez %v1319_v57  ;;  %vm1336_vm2 = vnez %v1321_v60 }
  0x59   :  { %vm152_vm13 = vmand %vm86_vm11, %vm120_vm4  ;;  %vm1329_vm11 = vnez %v1306_v33  ;;  %vm505_vm4 = vcmask 1024  }
  0x5a   :  { %vm1219_vm14 = vmpackc.low %vm152_vm13, %vm151_vm3 }
  0x5b   :  { %777 = vmatpush3.bf16.msk.msra.mxu0 %vm1219_vm14, %v902_v13  ;;  %809 = vmatpush3.bf16.msk.msra.mxu1 %vm1219_vm14, %v902_v13 }
  0x5c   :  { %811 = vmatprep.subr.msk.bf16.mxu0 %vm964_vm10, %v902_v13  ;;  %vm1328_vm10 = vnez %v1304_v27 }
  0x5e   :  { %313 = vmatmul.mubr.f32.vlgmr.msra.gmra.mrb[0].mxu0 %v1080_v41  ;;  %395 = vmatmul.mubr.f32.vlgmr.msra.gmra.mrb[0].mxu1 %v1086_v42 }
  0x5f   :  { %813 = vmatpush3.bf16.msk.msra.mxu0 %vm980_vm1, %v902_v13  ;;  %476 = vmatprep.mubr.f32.mxu0 %v409_v5  ;;  %vm1330_vm1 = vnez %v1308_v38 }
  0x60   :  { %815 = vmatprep.subr.msk.bf16.mxu0 %vm996_vm8, %v902_v13  ;;  %vm1332_vm8 = vnez %v1313_v48 }
  0x63   :  { %817 = vmatpush3.bf16.msk.msra.mxu0 %vm1012_vm0, %v902_v13  ;;  %vm1333_vm0 = vnez %v1315_v51 }
  0x64   :  { %819 = vmatprep.subr.msk.bf16.mxu0 %vm1328_vm10, %v902_v13 }
  0x67   :  { %821 = vmatpush3.bf16.msk.msra.mxu0 %vm1329_vm11, %v902_v13 }
  0x68   :  { %823 = vmatprep.subr.msk.bf16.mxu0 %vm1330_vm1, %v902_v13 }
  0x6b   :  { %825 = vmatpush3.bf16.msk.msra.mxu0 %vm1331_vm9, %v902_v13 }
  0x6c   :  { %827 = vmatprep.subr.msk.bf16.mxu0 %vm1332_vm8, %v902_v13 }
  0x6f   :  { %829 = vmatpush3.bf16.msk.msra.mxu0 %vm1333_vm0, %v902_v13 }
  0x70   :  { %831 = vmatprep.subr.msk.bf16.mxu0 %vm1334_vm7, %v902_v13 }
  0x73   :  { %833 = vmatpush3.bf16.msk.msra.mxu0 %vm1335_vm15, %v902_v13 }
  0x74   :  { %835 = vmatprep.subr.msk.bf16.mxu0 %vm1336_vm2, %v902_v13 }
  0x77   :  { %837 = vmatpush3.bf16.msk.msra.mxu0 %vm1194_vm12, %v902_v13  ;;  %vm487_vm12 = vcmask 58368  }
  0x78   :  { %839 = vmatprep.subr.msk.bf16.mxu0 %vm1208_vm5, %v902_v13 }
  0x7b   :  { %841 = vmatpush3.bf16.msk.msra.mxu0 %vm1219_vm14, %v902_v13 }
  0x7e   :  { %477 = vmatmul.mubr.f32.vlgmr.msra.gmra.mrb[2].mxu0 %v408_v3 }
 0x131   :  { %v673_v6 = vpop.f32.mrb[0].mxu0  ;;  %v708_v7 = vpop.f32.mrb[0].mxu1 }
 0x132   :  { %v674_v8 = vpop.f32.mrb[1].mxu0  ;;  %v709_v9 = vpop.f32.mrb[1].mxu1 }
 0x133   :  { %v675_v10 = vadd.f32 %v674_v8, %v673_v6  ;;  %v710_v11 = vadd.f32 %v709_v9, %v708_v7 }
 0x151   :  { %v743_v12 = vpop.f32.mrb[2].mxu0 }
 0x152   :  { %v744_v14 = vpop.f32.mrb[3].mxu0 }
 0x153   :  { %v745_v15 = vadd.f32 %v744_v14, %v743_v12 }
 0x155   :  { %v482_v16 = vmul.f32 %v745_v15, %v710_v11 }
 0x157   :  { %v483_v17 = vmax.f32 %v482_v16, 1e-16 }
 0x159   :  { %846 = vrsqrt.f32 %v483_v17 }
 0x163   :  { %v847_v18 = vpop.eup %846 }
 0x164   :  { %v485_v19 = vmul.f32 %v847_v18, %v675_v10 }
 0x166   :  { %v486_v20 = vmul.f32 2.0, %v485_v19 }
 0x168   :  { %v488_v21 = vsel %vm487_vm12, %v486_v20, -inf }
 0x169   :  { %489 = vmax.xlane.f32.xlu0 %v488_v21 }
 0x1f6   :  { %v490_v13 = vpop.xlane.xlu0 %489 }
 0x1f7   :  { %v491_v22 = vsub.f32 %v486_v20, %v490_v13 }
 0x1f9   :  { %v492_v23 = vmul.f32 1.442695, %v491_v22 }
 0x1fb   :  { %848 = vpow2.f32 %v492_v23 }
 0x205   :  { %v849_v24 = vpop.eup %848 }
 0x206   :  { %v494_v25 = vsel %vm487_vm12, %v849_v24, 0.0 }
 0x207   :  { %495 = vadd.xlane.f32.xlu0 %v494_v25 }
 0x294   :  { %v496_v26 = vpop.xlane.xlu0 %495 }
 0x295   :  { %850 = vlog2.f32 %v496_v26 }
 0x29f   :  { %v851_v27 = vpop.eup %850 }
 0x2a0   :  { %v498_v28 = vmul.f32 0.6931472, %v851_v27 }
 0x2a2   :  { %v499_v29 = vadd.f32 %v498_v28, %v490_v13 }
 0x2a4   :  { %v500_v30 = vsub.f32 %v499_v29, %v486_v20 }
 0x2a6   :  { %v504_v31 = vsel %vm503_vm6, %v500_v30, 0.0 }
 0x2a7   :  { %506 = vst.msk [vmem:[%s1285_s2] sm:$0x3] %vm505_vm4, %v504_v31 }
 0x2a8   :  { %511 = vsyncpa [#allocation3], 1 }
 0x2a9   :  { %512 = vsyncpa [#allocation5], 1 }

</bundles_post_ra>
